<compile_context>
chip_gen: v6e
topology: v6e:2x2x1
jax: 0.10.0
libtpu: 0.0.40
codegen_flags: <defaults>
</compile_context>

<pallas_src>
import functools

import jax
import jax.numpy as jnp
from jax import lax
from jax.experimental import pallas as pl
from jax.experimental.pallas import tpu as pltpu

LEAKY_ALPHA = 0.2      # pyGAT default LeakyReLU slope
NEG_INF = -9e15        # pyGAT masking constant (real column, no edge)
PAD_NEG = -1.0e38      # padded columns: exp() underflows to exactly 0


def _round_up(v, m):
    return ((v + m - 1) // m) * m


def _pad2(a, rows, cols):
    return jnp.pad(a, ((0, rows - a.shape[0]), (0, cols - a.shape[1])))


def _nbytes(arrs):
    return int(sum(int(a.size) * a.dtype.itemsize for a in arrs))


def _vmem_ceiling_bytes():
    """~85% of physical VMEM; conservative fallback that is also safe on v7x."""
    try:
        cap = getattr(pltpu.get_tpu_info(), "vmem_capacity_bytes", None)
        if cap:
            return int(0.85 * int(cap))
    except Exception:
        pass
    return 48 * 2**20


def _vmem_limit(estimate_bytes, ceiling):
    return int(min(ceiling, max(32 * 2**20, 2 * int(estimate_bytes))))


# ---------------------------------------------------------------------------
# Kernel 1: fea_transform + ReLU + GAT weight matmul  (row-tiled)
# ---------------------------------------------------------------------------
def _node_kernel(x_ref, w_fea_ref, b_fea_ref, w_gat_ref, wh_ref):
    f32, bf16 = jnp.float32, jnp.bfloat16
    s = jnp.dot(x_ref[...], w_fea_ref[...], preferred_element_type=f32) + b_fea_ref[...]
    s = jnp.maximum(s, 0.0)                                        # ReLU, f32
    wh_ref[...] = jnp.dot(s.astype(bf16), w_gat_ref[...], preferred_element_type=f32)


# ---------------------------------------------------------------------------
# Kernel 2: GAT attention — masked softmax over row blocks, deferred norm
# ---------------------------------------------------------------------------
def _attn_kernel(n_real, tn, wh_all_ref, adj_ref, a1_ref, a2_ref, emb_ref):
    f32, bf16 = jnp.float32, jnp.bfloat16
    start = pl.multiple_of(pl.program_id(0) * tn, tn)
    wh_all = wh_all_ref[...]                                       # (Np, Dp) f32, resident
    wh_blk = wh_all_ref[pl.ds(start, tn), :]                       # (TN, Dp) f32

    # e[i, j] = leakyrelu(wh1[i] + wh2[j]);  wh2 is produced lane-dense (1, Np).
    wh1 = jnp.dot(wh_blk, a1_ref[...], preferred_element_type=f32)            # (TN, 1)
    wh2 = lax.dot_general(a2_ref[...], wh_all, (((0,), (1,)), ((), ())),
                          preferred_element_type=f32)                         # (1, Np)
    e = wh1 + wh2
    e = jnp.where(e > 0, e, LEAKY_ALPHA * e)

    # Mask: real non-neighbors get the pyGAT -9e15 constant; padded columns get
    # -1e38 so exp() underflows to exactly 0.  (1, Np) row, broadcast by where.
    col = lax.broadcasted_iota(jnp.int32, (1, e.shape[1]), 1)
    mask_val = jnp.where(col < n_real, jnp.float32(NEG_INF), jnp.float32(PAD_NEG))
    e = jnp.where(adj_ref[...] > 0, e, mask_val)

    # Row softmax with deferred normalization: scale the (TN, Dp) result,
    # not the (TN, Np) attention matrix.
    m = jnp.max(e, axis=1, keepdims=True)
    p = jnp.exp(e - m)
    inv = pl.reciprocal(jnp.sum(p, axis=1, keepdims=True), approx=True)       # EUP slot
    h_prime = jnp.dot(p.astype(bf16), wh_all.astype(bf16),
                      preferred_element_type=f32) * inv                        # (TN, Dp)

    # ELU: exp only on the non-positive branch -> no overflow in untaken branch.
    # TODO(synk): jnp.expm1 would buy a little small-negative precision.
    emb_ref[...] = jnp.where(h_prime > 0, h_prime,
                             jnp.exp(jnp.minimum(h_prime, 0.0)) - 1.0).astype(emb_ref.dtype)


# ---------------------------------------------------------------------------
# Kernel 3: con = emb @ emb.T row block + encoder/decoder LSTM row block
# ---------------------------------------------------------------------------
def _out_kernel(tn, emb_all_ref, x_ref,
                we_i_ref, we_g_ref, we_o_ref, be_i_ref, be_g_ref, be_o_ref,
                wd_i_ref, wd_g_ref, wd_o_ref, bd_i_ref, bd_g_ref, bd_o_ref,
                con_ref, att_ref):
    f32, bf16 = jnp.float32, jnp.bfloat16
    start = pl.multiple_of(pl.program_id(0) * tn, tn)

    # con row block = emb_blk @ emb_all.T (contract feature axis); emb_all is
    # VMEM-resident, its row block is sliced in-kernel (no duplicated input).
    emb_all = emb_all_ref[...]                                     # (Np, Dp) bf16
    emb_blk = emb_all_ref[pl.ds(start, tn), :]                     # (TN, Dp) bf16
    con_ref[...] = lax.dot_general(emb_blk, emb_all, (((1,), (1,)), ((), ())),
                                   preferred_element_type=f32)

    # Single-step encoder LSTM from h0 = c0 = 0 (forget gate dropped).
    x_blk = x_ref[...]                                             # (TN, Dp) bf16
    gi = jax.nn.sigmoid(jnp.dot(x_blk, we_i_ref[...], preferred_element_type=f32) + be_i_ref[...])
    gg = jnp.tanh(jnp.dot(x_blk, we_g_ref[...], preferred_element_type=f32) + be_g_ref[...])
    go = jax.nn.sigmoid(jnp.dot(x_blk, we_o_ref[...], preferred_element_type=f32) + be_o_ref[...])
    h_enc = (go * jnp.tanh(gi * gg)).astype(bf16)                  # (TN, Hp)

    # Single-step decoder LSTM from h0 = c0 = 0 (forget gate dropped).
    di = jax.nn.sigmoid(jnp.dot(h_enc, wd_i_ref[...], preferred_element_type=f32) + bd_i_ref[...])
    dg = jnp.tanh(jnp.dot(h_enc, wd_g_ref[...], preferred_element_type=f32) + bd_g_ref[...])
    do = jax.nn.sigmoid(jnp.dot(h_enc, wd_o_ref[...], preferred_element_type=f32) + bd_o_ref[...])
    att_ref[...] = do * jnp.tanh(di * dg)


# ---------------------------------------------------------------------------
# Wrapper
# ---------------------------------------------------------------------------
def trace_dae_forward(x, adj, params, *, row_tile=None):
    N, D = x.shape
    H = params["w_fea"].shape[1]
    f32, bf16 = jnp.float32, jnp.bfloat16

    # 256-aligned node count for the v6e/v7x 256x256 MXU; feature dims only
    # need lane alignment (128).
    Np = _round_up(N, 256)
    Dp = _round_up(D, 128)
    Hp = _round_up(H, 128)
    TN = row_tile if row_tile is not None else (256 if Np >= 1024 else 128)
    assert Np % TN == 0
    grid = (Np // TN,)
    nsteps = Np // TN
    ceiling = _vmem_ceiling_bytes()

    x_b = _pad2(x.astype(f32), Np, Dp).astype(bf16)
    adj_i8 = _pad2((adj > 0).astype(jnp.int8), Np, Np)             # int8: 4x smaller than f32

    w_fea_b = _pad2(params["w_fea"].astype(f32), Dp, Hp).astype(bf16)
    b_fea_p = _pad2(params["b_fea"].astype(f32), 1, Hp)
    w_gat_b = _pad2(params["w_gat"].astype(f32), Hp, Dp).astype(bf16)
    a1_p = _pad2(params["a1"].astype(f32), Dp, 1)
    a2_p = _pad2(params["a2"].astype(f32), Dp, 1)

    # PyTorch packed LSTM gate order is [i | f | g | o]; the forget gate
    # multiplies c0 = 0 and is dropped (25% fewer LSTM flops/bytes).  Each
    # remaining gate becomes its own lane-dense (padded) matmul.
    def _gates(w, b, gdim, in_pad, out_pad):
        out = []
        for gidx in (0, 2, 3):                                     # i, g, o
            wg = _pad2(w[:, gidx * gdim:(gidx + 1) * gdim].astype(f32),
                       in_pad, out_pad).astype(bf16)
            bg = _pad2(b[:, gidx * gdim:(gidx + 1) * gdim].astype(f32), 1, out_pad)
            out.append((wg, bg))
        return out

    (we_i, be_i), (we_g, be_g), (we_o, be_o) = _gates(
        params["w_enc"], params["b_enc"], H, Dp, Hp)
    (wd_i, bd_i), (wd_g, bd_g), (wd_o, bd_o) = _gates(
        params["w_dec"], params["b_dec"], D, Hp, Dp)

    const = lambda i: (0, 0)
    rowblk = lambda i: (i, 0)

    # ---- call 1: fea_transform + ReLU + GAT weight matmul -> wh (f32) ------
    in1 = [x_b, w_fea_b, b_fea_p, w_gat_b]
    est1 = 2 * (TN * Dp * 2 + _nbytes(in1[1:]) + TN * Dp * 4)
    wh = pl.pallas_call(
        _node_kernel,
        grid=grid,
        in_specs=[
            pl.BlockSpec((TN, Dp), rowblk),
            pl.BlockSpec((Dp, Hp), const),
            pl.BlockSpec((1, Hp), const),
            pl.BlockSpec((Hp, Dp), const),
        ],
        out_specs=pl.BlockSpec((TN, Dp), rowblk),
        out_shape=jax.ShapeDtypeStruct((Np, Dp), f32),
        compiler_params=pltpu.CompilerParams(
            dimension_semantics=("parallel",),
            vmem_limit_bytes=_vmem_limit(est1, ceiling)),
        cost_estimate=pl.CostEstimate(
            flops=int(4 * Np * Dp * Hp),
            transcendentals=0,
            bytes_accessed=int(_nbytes(in1) + Np * Dp * 4)),
    )(*in1)

    # ---- call 2: masked-softmax GAT attention -> emb (bf16) ----------------
    in2 = [wh, adj_i8, a1_p, a2_p]
    est2 = 2 * (Np * Dp * 4 + TN * Np + TN * Dp * 2) + 5 * TN * Np * 4
    emb = pl.pallas_call(
        functools.partial(_attn_kernel, N, TN),
        grid=grid,
        in_specs=[
            # TODO(synk): pipeline_mode=pl.Buffered(1) on this constant block
            # would reclaim its second buffer on VMEM-tight v7x configs.
            pl.BlockSpec((Np, Dp), const),                         # wh (all rows, resident)
            pl.BlockSpec((TN, Np), rowblk),                        # adj row block (int8)
            pl.BlockSpec((Dp, 1), const),                          # a1
            pl.BlockSpec((Dp, 1), const),                          # a2
        ],
        out_specs=pl.BlockSpec((TN, Dp), rowblk),
        out_shape=jax.ShapeDtypeStruct((Np, Dp), bf16),
        compiler_params=pltpu.CompilerParams(
            dimension_semantics=("parallel",),
            vmem_limit_bytes=_vmem_limit(est2, ceiling)),
        cost_estimate=pl.CostEstimate(
            flops=int(2 * Np * Np * Dp + 2 * Np * Dp * (1 + nsteps) + 6 * Np * Np),
            transcendentals=int(Np * Np + Np + Np * Dp),
            bytes_accessed=int(_nbytes(in2) + Np * Dp * 2)),
    )(*in2)

    # ---- call 3: con row blocks + encoder/decoder LSTM -> con, att ---------
    in3 = [emb, x_b, we_i, we_g, we_o, be_i, be_g, be_o,
           wd_i, wd_g, wd_o, bd_i, bd_g, bd_o]
    est3 = (2 * (Np * Dp * 2 + TN * Dp * 2 + _nbytes(in3[2:])
                 + TN * Np * 4 + TN * Dp * 4) + 6 * TN * Hp * 4)
    # TODO(synk): emit con in bf16 if downstream tolerates it — halves the
    # dominant HBM writeback stream on v6e/v7x.
    con_p, att_p = pl.pallas_call(
        functools.partial(_out_kernel, TN),
        grid=grid,
        in_specs=[
            pl.BlockSpec((Np, Dp), const),                         # emb (all rows, resident)
            pl.BlockSpec((TN, Dp), rowblk),                        # x row block
            pl.BlockSpec((Dp, Hp), const), pl.BlockSpec((Dp, Hp), const),
            pl.BlockSpec((Dp, Hp), const),
            pl.BlockSpec((1, Hp), const), pl.BlockSpec((1, Hp), const),
            pl.BlockSpec((1, Hp), const),
            pl.BlockSpec((Hp, Dp), const), pl.BlockSpec((Hp, Dp), const),
            pl.BlockSpec((Hp, Dp), const),
            pl.BlockSpec((1, Dp), const), pl.BlockSpec((1, Dp), const),
            pl.BlockSpec((1, Dp), const),
        ],
        out_specs=(
            pl.BlockSpec((TN, Np), rowblk),                        # con row block
            pl.BlockSpec((TN, Dp), rowblk),                        # att row block
        ),
        out_shape=(jax.ShapeDtypeStruct((Np, Np), f32),
                   jax.ShapeDtypeStruct((Np, Dp), f32)),
        compiler_params=pltpu.CompilerParams(
            dimension_semantics=("parallel",),
            vmem_limit_bytes=_vmem_limit(est3, ceiling)),
        cost_estimate=pl.CostEstimate(
            flops=int(2 * Np * Np * Dp + 12 * Np * Dp * Hp + 10 * Np * (Dp + Hp)),
            transcendentals=int(4 * Np * Hp + 4 * Np * Dp),
            bytes_accessed=int(_nbytes(in3) + Np * Np * 4 + Np * Dp * 4)),
    )(*in3)

    return con_p[:N, :N], att_p[:N, :D]


# ---------------------------------------------------------------------------
# Pure-JAX reference (mirrors the PyTorch forward at the same mixed precision)
# ---------------------------------------------------------------------------
def trace_dae_reference(x, adj, p):
    f32, bf16 = jnp.float32, jnp.bfloat16
    H = p["w_fea"].shape[1]
    D = x.shape[1]
    xb = x.astype(bf16)

    s = jnp.maximum(jnp.dot(xb, p["w_fea"].astype(bf16),
                            preferred_element_type=f32) + p["b_fea"], 0.0)
    wh = jnp.dot(s.astype(bf16), p["w_gat"].astype(bf16), preferred_element_type=f32)
    e = wh @ p["a1"] + (wh @ p["a2"]).T
    e = jnp.where(e > 0, e, LEAKY_ALPHA * e)
    e = jnp.where(adj > 0, e, NEG_INF)
    attn = jax.nn.softmax(e, axis=1)
    h_prime = jnp.dot(attn.astype(bf16), wh.astype(bf16), preferred_element_type=f32)
    emb = jnp.where(h_prime > 0, h_prime, jnp.exp(jnp.minimum(h_prime, 0.0)) - 1.0)
    emb_b = emb.astype(bf16)
    con = lax.dot_general(emb_b, emb_b, (((1,), (1,)), ((), ())),
                          preferred_element_type=f32)

    def lstm_step(inp_b, w, b, gdim):
        wi, wg, wo = (w[:, k * gdim:(k + 1) * gdim].astype(bf16) for k in (0, 2, 3))
        bi, bg, bo = (b[:, k * gdim:(k + 1) * gdim] for k in (0, 2, 3))
        gi = jax.nn.sigmoid(jnp.dot(inp_b, wi, preferred_element_type=f32) + bi)
        gg = jnp.tanh(jnp.dot(inp_b, wg, preferred_element_type=f32) + bg)
        go = jax.nn.sigmoid(jnp.dot(inp_b, wo, preferred_element_type=f32) + bo)
        return go * jnp.tanh(gi * gg)

    h_enc = lstm_step(xb, p["w_enc"], p["b_enc"], H)
    att = lstm_step(h_enc.astype(bf16), p["w_dec"], p["b_dec"], D)
    return con, att


def make_params(key, in_dim, num_nodes, hidden_dim):
    ks = jax.random.split(key, 9)
    f = jnp.float32

    def rnd(k, shape, scale):
        return jax.random.normal(k, shape, dtype=f) * scale

    D, H = in_dim, hidden_dim
    return {
        # fea_transform: Linear(in_dim, hidden_dim)  (weight stored transposed)
        "w_fea": rnd(ks[0], (D, H), 1.0 / jnp.sqrt(D)),
        "b_fea": rnd(ks[1], (1, H), 1.0 / jnp.sqrt(D)),
        # GAT: W (hidden_dim, in_dim), attention vector split into a1/a2 (in_dim, 1)
        "w_gat": rnd(ks[2], (H, D), 1.0 / jnp.sqrt(H)),
        "a1": rnd(ks[3], (D, 1), 1.0 / jnp.sqrt(D)),
        "a2": rnd(ks[4], (D, 1), 1.0 / jnp.sqrt(D)),
        # encoder LSTM (in_dim -> hidden_dim): W_ih^T packed [i|f|g|o], combined bias
        "w_enc": rnd(ks[5], (D, 4 * H), 1.0 / jnp.sqrt(H)),
        "b_enc": rnd(ks[6], (1, 4 * H), 1.0 / jnp.sqrt(H)),
        # decoder LSTM (hidden_dim -> in_dim)
        "w_dec": rnd(ks[7], (H, 4 * D), 1.0 / jnp.sqrt(D)),
        "b_dec": rnd(ks[8], (1, 4 * D), 1.0 / jnp.sqrt(D)),
    }


if __name__ == "__main__":
    in_dim, num_nodes, hidden_dim = 16, 8, 32
    key = jax.random.PRNGKey(0)
    kx, kadj, kp = jax.random.split(key, 3)

    x = jax.random.normal(kx, (num_nodes, in_dim), dtype=jnp.float32)
    adj = (jax.random.uniform(kadj, (num_nodes, num_nodes)) > 0.5).astype(jnp.float32)
    adj = jnp.maximum(adj, jnp.eye(num_nodes, dtype=jnp.float32))  # self-loops

    params = make_params(kp, in_dim, num_nodes, hidden_dim)

    con_adj, att_adj = trace_dae_forward(x, adj, params)
    jax.block_until_ready((con_adj, att_adj))

    con_ref, att_ref = trace_dae_reference(x, adj, params)
    assert con_adj.shape == (num_nodes, num_nodes)
    assert att_adj.shape == (num_nodes, in_dim)
    # con goes through the approx-reciprocal softmax + bf16 emb; allow a bit more slack.
    assert jnp.allclose(con_adj, con_ref, atol=5e-2, rtol=5e-2), \
        float(jnp.max(jnp.abs(con_adj - con_ref)))
    assert jnp.allclose(att_adj, att_ref, atol=1e-2, rtol=1e-2), \
        float(jnp.max(jnp.abs(att_adj - att_ref)))

    print("KERNEL_OK")
</pallas_src>

<mosaic_0001>
module attributes {stable_mosaic.version = 11 : i64} {
  func.func @_node_kernel(%arg0: i32, %arg1: memref<128x128xbf16, #tpu.memory_space<vmem>>, %arg2: memref<128x128xbf16, #tpu.memory_space<vmem>>, %arg3: memref<1x128xf32, #tpu.memory_space<vmem>>, %arg4: memref<128x128xbf16, #tpu.memory_space<vmem>>, %arg5: memref<128x128xf32, #tpu.memory_space<vmem>>) attributes {dimension_semantics = [#tpu.dimension_semantics<parallel>], iteration_bounds = array<i64: 2>, scalar_prefetch = 0 : i64, scratch_operands = 0 : i64, tpu.core_type = #tpu.core_type<tc>, window_params = [{transform_indices = @transform_0, window_bounds = array<i64: 128, 128>}, {pipeline_mode = #tpu.pipeline_mode<synchronous>, transform_indices = @transform_1, window_bounds = array<i64: 128, 128>}, {pipeline_mode = #tpu.pipeline_mode<synchronous>, transform_indices = @transform_2, window_bounds = array<i64: 1, 128>}, {pipeline_mode = #tpu.pipeline_mode<synchronous>, transform_indices = @transform_3, window_bounds = array<i64: 128, 128>}, {transform_indices = @transform_4, window_bounds = array<i64: 128, 128>}]} {
    %c0 = arith.constant 0 : index
    %c0_0 = arith.constant 0 : index
    %0 = vector.load %arg1[%c0, %c0_0] : memref<128x128xbf16, #tpu.memory_space<vmem>>, vector<128x128xbf16>
    %c0_1 = arith.constant 0 : index
    %c0_2 = arith.constant 0 : index
    %1 = vector.load %arg2[%c0_1, %c0_2] : memref<128x128xbf16, #tpu.memory_space<vmem>>, vector<128x128xbf16>
    %cst = arith.constant dense<0.000000e+00> : vector<128x128xf32>
    %2 = tpu.matmul %0, %1, %cst {dimension_numbers = #tpu.dot_dimension_numbers<[1], [0], [0], [1], [0, 0, 1, 1], [], []>} : vector<128x128xbf16>, vector<128x128xbf16>, vector<128x128xf32> -> vector<128x128xf32>
    %c0_3 = arith.constant 0 : index
    %c0_4 = arith.constant 0 : index
    %3 = vector.load %arg3[%c0_3, %c0_4] : memref<1x128xf32, #tpu.memory_space<vmem>>, vector<1x128xf32>
    %4 = vector.broadcast %3 : vector<1x128xf32> to vector<128x128xf32>
    %5 = arith.addf %2, %4 : vector<128x128xf32>
    %cst_5 = arith.constant 0.000000e+00 : f32
    %6 = vector.broadcast %cst_5 : f32 to vector<128x128xf32>
    %7 = arith.maximumf %5, %6 : vector<128x128xf32>
    %8 = arith.truncf %7 : vector<128x128xf32> to vector<128x128xbf16>
    %c0_6 = arith.constant 0 : index
    %c0_7 = arith.constant 0 : index
    %9 = vector.load %arg4[%c0_6, %c0_7] : memref<128x128xbf16, #tpu.memory_space<vmem>>, vector<128x128xbf16>
    %cst_8 = arith.constant dense<0.000000e+00> : vector<128x128xf32>
    %10 = tpu.matmul %8, %9, %cst_8 {dimension_numbers = #tpu.dot_dimension_numbers<[1], [0], [0], [1], [0, 0, 1, 1], [], []>} : vector<128x128xbf16>, vector<128x128xbf16>, vector<128x128xf32> -> vector<128x128xf32>
    %c0_9 = arith.constant 0 : index
    %c0_10 = arith.constant 0 : index
    %11 = vector.load %arg5[%c0_9, %c0_10] : memref<128x128xf32, #tpu.memory_space<vmem>>, vector<128x128xf32>
    tpu.vector_store %arg5[%c0_9, %c0_10], %10 {strides = array<i32>} : memref<128x128xf32, #tpu.memory_space<vmem>>, vector<128x128xf32>,
    return
  }
  func.func @transform_0(%arg0: i32) -> (i32, i32) {
    %c0_i32 = arith.constant 0 : i32
    %c0_i32_0 = arith.constant 0 : i32
    return %arg0, %c0_i32 : i32, i32
  }
  func.func @transform_1(%arg0: i32) -> (i32, i32) {
    %c0_i32 = arith.constant 0 : i32
    %c0_i32_0 = arith.constant 0 : i32
    %c0_i32_1 = arith.constant 0 : i32
    return %c0_i32, %c0_i32_0 : i32, i32
  }
  func.func @transform_2(%arg0: i32) -> (i32, i32) {
    %c0_i32 = arith.constant 0 : i32
    %c0_i32_0 = arith.constant 0 : i32
    %c0_i32_1 = arith.constant 0 : i32
    return %c0_i32, %c0_i32_0 : i32, i32
  }
  func.func @transform_3(%arg0: i32) -> (i32, i32) {
    %c0_i32 = arith.constant 0 : i32
    %c0_i32_0 = arith.constant 0 : i32
    %c0_i32_1 = arith.constant 0 : i32
    return %c0_i32, %c0_i32_0 : i32, i32
  }
  func.func @transform_4(%arg0: i32) -> (i32, i32) {
    %c0_i32 = arith.constant 0 : i32
    %c0_i32_0 = arith.constant 0 : i32
    return %arg0, %c0_i32 : i32, i32
  }
}

</mosaic_0001>

<bundles_post_ra>
// kernel: tpu_custom_call.1
= control target key start
LH: loop header
LB: loop body
LE: loop exit
PB: predicated region body
PF: predicated region fallthrough
CT: control target
= control target key end

     0   :  { %9 = vsyncpa [#allocation3], 0  ;;  %s1436_s0 = inlined_call_operand.hbm [shape: bf16[256,128], index: 0, kind: input, shape index: {}]   ;;  %s1437_s1 = inlined_call_operand.hbm [shape: bf16[128,128], index: 1, kind: input, shape index: {}]   ;;  %s1438_s2 = inlined_call_operand.vmem [shape: f32[1,128], index: 2, kind: input, shape index: {}]   ;;  %s1439_s3 = inlined_call_operand.hbm [shape: bf16[128,128], index: 3, kind: input, shape index: {}]   ;;  %s1440_s4 = inlined_call_operand.hbm [shape: f32[256,128], index: 4, kind: output, shape index: {}]  }
   0x1   :  { %11 = vsyncpa [#allocation3 + $0x1], 0 }
   0x2   :  { %12 = vsyncpa [#allocation6], 0 }
   0x3   :  { %13 = vsyncpa [#allocation4], 0 }
   0x4   :  { %15 = vsyncpa [#allocation4 + $0x1], 0  ;;  %s1206_s15 = smov 0   ;;  %s1208_s16 = smov 0  }
   0x5   :  { %s1210_s17 = smov 0   ;;  %s1212_s18 = smov 0  }
   0x6 LB: > { %s1227_s19 = sadd.s32 4294967295, %s1171_s18   ;;  %s787_s20 = sadd.s32 4294967294, %s1171_s18   ;;  %s1171_s18 = sphi %s1212_s18, %s1461_s18   ;;  %s1167_s17 = sphi %s1210_s17, %s1460_s17   ;;  %s1163_s16 = sphi %s1208_s16, %s1459_s16   ;;  %s1159_s15 = sphi %s1206_s15, %s1458_s15  }
   0x7   : > { %p41_p0 = scmp.ne.s32.totalorder %s1163_s16, %s1159_s15  ;;  %p1441_p1 = scmp.eq.s32.totalorder %s1227_s19, 0 }
   0x8   : > { %p128_p2 = scmp.eq.s32.totalorder %s1227_s19, 1  ;;  %p134_p3 = scmp.eq.s32.totalorder %s787_s20, 1 }
   0x9   : > { %p1236_p4 = por %p1441_p1, %p41_p0  ;;  %p788_p5 = scmp.ge.s32.totalorder %s1171_s18, 1 }
   0xa   : > { %p1241_p6 = por %p134_p3, %p41_p0  ;;  %p141_p7 = scmp.lt.s32.totalorder %s1171_s18, 3 }
   0xb   : > { %s1445_s21 = scalar_select %p1236_p4, 1, 0 }
   0xc   : > { %s1446_s22 = scalar_select %p1241_p6, 1, 0 }
   0xd   : > { %p1246_p8 = pnand %p788_p5, %p141_p7  ;;  %s1173_s24 = smov [#allocation5]  }
   0xe   : > { %s153_s25 = sshll.u32 %s1173_s24, 4  ;;  %s1174_s27 = smov [#allocation7]   ;;  %s154_s25 = int_to_ptr.vmem [resolvable:$true] %s153_s25 }
   0xf   : > { %s1447_s23 = scalar_select %p1246_p8, 1, 0 }
  0x10   : > { %p940_p9 = pneg %p1246_p8  ;;  %s169_s28 = sshll.u32 %s1174_s27, 4  ;;  %s170_s28 = int_to_ptr.vmem [resolvable:$true] %s169_s28 }
  0x11   : > { %s1034_s29 = scalar_lea.vmem %s154_s25, 1024  ;;  %p1042_p5 = scmp.lt.s32.totalorder %s154_s25, %s154_s25 }
  0x12   : > { %p1255_p11 = pnand %p940_p9, %p1441_p1  ;;  %p1035_p13 = scmp.ne.s32.totalorder %s154_s25, %s1034_s29 }
  0x13   : > { %p1043_p7 = scmp.lt.s32.totalorder %s1034_s29, %s1034_s29 }
  0x14   : > { %p1025_p12 = pneg %p1255_p11 }
  0x15   : > { %p1044_p10 = por %p1043_p7, %p1042_p5 }
  0x16   : > { %p1037_p0 = pnand %p1035_p13, %p1025_p12 }
  0x18   : > { %p1038_p3 = pneg %p1037_p0 }
  0x1a   : > { %p1045_p9 = pnand %p1044_p10, %p1038_p3 }
  0x1c   : > { %1048 = shalt.err (!%p1045_p9)
}
  0x1d   : > { %s1175_s30 = smov 64   ;;  %s1176_s5 = smov 4  }
  0x1e   : > { %943 = dma.hbm_to_vmem [thread:$0]  (!%p1255_p11), %s1437_s1, 1024, %s154_s25, [#allocation6], %s1175_s30, %s1175_s30, %s1176_s5  }
  0x1f   : > { %s1060_s8 = scalar_lea.vmem %s170_s28, 1024  ;;  %p1068_p10 = scmp.lt.s32.totalorder %s170_s28, %s170_s28 }
  0x20   : > { %p1061_p13 = scmp.ne.s32.totalorder %s170_s28, %s1060_s8  ;;  %p1069_p3 = scmp.lt.s32.totalorder %s1060_s8, %s1060_s8 }
  0x22   : > { %p1063_p0 = pnand %p1061_p13, %p1025_p12  ;;  %p1070_p7 = por %p1069_p3, %p1068_p10 }
  0x24   : > { %p1064_p5 = pneg %p1063_p0 }
  0x26   : > { %p1071_p9 = pnand %p1070_p7, %p1064_p5 }
  0x28   : > { %1074 = shalt.err (!%p1071_p9)
}
  0x29   : > { %946 = dma.hbm_to_vmem [thread:$0]  (!%p1255_p11), %s1439_s3, 1024, %s170_s28, [#allocation6], %s1175_s30, %s1175_s30, %s1176_s5  }
  0x2a   : > { %s1284_s11 = sadd.s32 1, %s1171_s18   ;;  %s28_s12 = sadd.s32 1, %s1167_s17 }
  0x2b   : > { %s25_s13 = ssub.s32 %s1171_s18, %s1284_s11  ;;  %p35_p12 = scmp.ne.s32.totalorder %s1167_s17, %s1163_s16 }
  0x2c   : > { %p26_p13 = scmp.eq.s32.totalorder %s25_s13, 0  ;;  %p36_p0 = scmp.eq.s32.totalorder %s1171_s18, 0 }
  0x2d   : > { %p1294_p5 = por %p128_p2, %p35_p12  ;;  %p957_p10 = scmp.lt.s32.totalorder %s1171_s18, 2 }
  0x2e   : > { %s1300_s20 = scalar_select %p26_p13, %s1167_s17, %s28_s12  }
  0x2f   : > { %s1449_s14 = scalar_select %p1294_p5, 1, 0 }
  0x30   : > { %p37_p3 = por %p36_p0, %p35_p12  ;;  %s183_s24 = sand.u32 1, %s1167_s17  }
  0x31   : > { %s792_s25 = sshll.u32 %s183_s24, 6  ;;  %s830_s26 = sshll.u32 %s1171_s18, 10 }
  0x32   : > { %s1307_s29 = scalar_lea.hbm %s1436_s0, %s830_s26  ;;  %s187_s6 = scalar_lea.vmem [#allocation2], %s792_s25 }
  0x33   : > { %s194_s7 = sshll.u32 %s187_s6, 4  ;;  %p1311_p2 = pnand %p957_p10, %p37_p3  ;;  %s1309_s7 = int_to_ptr.vmem [resolvable:$true] %s194_s7 }
  0x34   : > { %s1315_s9 = scalar_lea.sflag [#allocation3], %s183_s24  ;;  %s1075_s10 = scalar_lea.hbm %s1307_s29, 1024 }
  0x35   : > { %p1076_p11 = scmp.ne.s32.totalorder %s1307_s29, %s1075_s10  ;;  %p1077_p7 = pneg %p1311_p2 }
  0x36   : > { %s1080_s25 = scalar_lea.hbm %s1436_s0, 2048  ;;  %p1081_p13 = scmp.lt.s32.totalorder %s1307_s29, %s1436_s0 }
  0x37   : > { %p1078_p9 = pnand %p1077_p7, %p1076_p11  ;;  %p1082_p0 = scmp.lt.s32.totalorder %s1080_s25, %s1075_s10 }
  0x39   : > { %p1079_p12 = pneg %p1078_p9  ;;  %p1083_p10 = por %p1082_p0, %p1081_p13 }
  0x3b   : > { %p1084_p3 = pnand %p1083_p10, %p1079_p12 }
  0x3d   : > { %1087 = shalt.err (!%p1084_p3)
}
  0x3e   : > { %s1088_s24 = scalar_lea.vmem %s1309_s7, 1024  ;;  %s1177_s28 = smov [#allocation2]  }
  0x3f   : > { %p1089_p1 = scmp.ne.s32.totalorder %s1309_s7, %s1088_s24  ;;  %s1093_s6 = sshll.u32 %s1177_s28, 4  ;;  %s1094_s6 = int_to_ptr.vmem [resolvable:$false] %s1093_s6 }
  0x40   : > { %s1095_s12 = scalar_lea.vmem %s1094_s6, 2048  ;;  %p1096_p9 = scmp.lt.s32.totalorder %s1309_s7, %s1094_s6 }
  0x41   : > { %p1091_p6 = pnand %p1089_p1, %p1077_p7  ;;  %p1097_p5 = scmp.lt.s32.totalorder %s1095_s12, %s1088_s24 }
  0x43   : > { %p1092_p11 = pneg %p1091_p6  ;;  %p1098_p4 = por %p1097_p5, %p1096_p9 }
  0x45   : > { %p1099_p8 = pnand %p1098_p4, %p1092_p11 }
  0x47   : > { %1102 = shalt.err (!%p1099_p8)
}
  0x48   : > { %950 = dma.hbm_to_vmem [thread:$0]  (!%p1311_p2), %s1307_s29, 1024, %s1309_s7, %s1315_s9, %s1175_s30, %s1175_s30, %s1176_s5  }
  0x49   : > { %p1451_p1 = scmp.ne.s32.totalorder %s1447_s23, 0 }
  0x4a   : > { %s1342_s10 = sand.u32 (!%p1451_p1), 1, %s1163_s16   ;;  %p1452_p4 = scmp.ne.s32.totalorder (!%p1451_p1), %s1445_s21, 0 }
  0x4b   : > { %206 = sbr.rel (%p1451_p1) target bundleno = 560 (0x230), region = 36  ;;  %s796_s13 = sshll.u32 (!%p1451_p1), %s1342_s10, 6 }
  0x4c   : > { %s209_s25 = scalar_lea.sflag (!%p1451_p1), [#allocation3], %s1342_s10  ;;  %s1346_s26 = scalar_lea.vmem (!%p1451_p1), [#allocation2], %s796_s13 }
  0x50   : > { %1146 = dma.done.wait (%p1452_p4), %s209_s25, 1024  }
  0x51   : > { %1148 = vsyncadd (%p1452_p4), %s209_s25, 4294966272  ;;  %p1453_p6 = scmp.eq.s32.totalorder %s1227_s19, 0 }
  0x53   : > { %1150 = dma.done.wait (%p1453_p6), [#allocation6], 2048   ;;  %p1454_p8 = pmov %p1453_p6 }
  0x54   : > { %v999_v0 = vld [vmem:[#allocation5 + $0x38] sm:$0xff]   ;;  %v1000_v1 = vld [vmem:[#allocation5 + $0x30] sm:$0xff]   ;;  %v1001_v2 = vld [vmem:[#allocation5 + $0x28] sm:$0xff]   ;;  %s799_s30 = sshll.u32 %s1342_s10, 7  ;;  %s831_s29 = sshll.u32 %s1227_s19, 11 }
  0x55   : > { %1152 = vsyncadd (%p1454_p8), [#allocation6], 4294965248  ;;  %864 = vmatprep.subr.bf16.mxu0 %v999_v0  ;;  %v1002_v3 = vld [vmem:[#allocation5 + $0x20] sm:$0xff]   ;;  %v1003_v5 = vld [vmem:[#allocation5 + $0x18] sm:$0xff]   ;;  %s1368_s5 = scalar_lea.vmem [#allocation8], %s799_s30  ;;  %s1389_s27 = scalar_lea.hbm %s1440_s4, %s831_s29 }
  0x56   : > { %865 = vmatpush3.bf16.msra.mxu0 %v999_v0  ;;  %v1007_v4 = vld [vmem:[%s1346_s26] sm:$0xff]   ;;  %v1004_v6 = vld [vmem:[#allocation5 + $0x10] sm:$0xff]   ;;  %v1015_v7 = vld [vmem:[#allocation7 + $0x38] sm:$0xff]   ;;  %s695_s7 = sshll.u32 %s1368_s5, 4  ;;  %s682_s24 = scalar_lea.sflag [#allocation4], %s1342_s10  ;;  %s1391_s7 = int_to_ptr.vmem [resolvable:$true] %s695_s7 }
  0x57   : > { %866 = vmatprep.subr.bf16.mxu0 %v1000_v1  ;;  %880 = vmatprep.mubr.bf16.mxu0 %v1007_v4  ;;  %v1016_v8 = vld [vmem:[#allocation7 + $0x30] sm:$0xff]   ;;  %v1005_v9 = vld [vmem:[#allocation5 + $0x8] sm:$0xff]   ;;  %v1006_v11 = vld [vmem:[#allocation5] sm:$0xff]   ;;  %s1103_s28 = scalar_lea.vmem %s1391_s7, 2048  ;;  %p1455_p2 = scmp.ne.s32.totalorder %s1449_s14, 0 }
  0x58   : > { %896 = vmatprep.subr.bf16.mxu1 %v1015_v7  ;;  %v1017_v10 = vld [vmem:[#allocation7 + $0x28] sm:$0xff]   ;;  %v1018_v12 = vld [vmem:[#allocation7 + $0x20] sm:$0xff]   ;;  %v1019_v13 = vld [vmem:[#allocation7 + $0x18] sm:$0xff]   ;;  %p1104_p5 = scmp.ne.s32.totalorder %s1391_s7, %s1103_s28  ;;  %s1178_s19 = smov [#allocation8]  }
  0x59   : > { %897 = vmatpush3.bf16.msra.mxu1 %v1015_v7  ;;  %v1008_v14 = vld [vmem:[%s1346_s26 + $0x8] sm:$0xff]   ;;  %v1009_v15 = vld [vmem:[%s1346_s26 + $0x10] sm:$0xff]   ;;  %v1010_v16 = vld [vmem:[%s1346_s26 + $0x18] sm:$0xff]   ;;  %s1107_s6 = sshll.u32 %s1178_s19, 4  ;;  %s1108_s6 = int_to_ptr.vmem [resolvable:$false] %s1107_s6 }
  0x5a   : > { %867 = vmatpush3.bf16.msra.mxu0 %v1000_v1  ;;  %898 = vmatprep.subr.bf16.mxu1 %v1016_v8  ;;  %v1011_v17 = vld [vmem:[%s1346_s26 + $0x20] sm:$0xff]   ;;  %v1012_v18 = vld [vmem:[%s1346_s26 + $0x28] sm:$0xff]   ;;  %v1013_v19 = vld [vmem:[%s1346_s26 + $0x30] sm:$0xff]   ;;  %p1105_p7 = pnand %p1104_p5, %p1455_p2  ;;  %s1109_s12 = scalar_lea.vmem %s1108_s6, 4096 }
  0x5b   : > { %868 = vmatprep.subr.bf16.mxu0 %v1001_v2  ;;  %v1014_v20 = vld [vmem:[%s1346_s26 + $0x38] sm:$0xff]   ;;  %v1020_v21 = vld [vmem:[#allocation7 + $0x10] sm:$0xff]   ;;  %v1021_v22 = vld [vmem:[#allocation7 + $0x8] sm:$0xff]   ;;  %p1110_p13 = scmp.lt.s32.totalorder %s1391_s7, %s1108_s6  ;;  %p1111_p0 = scmp.lt.s32.totalorder %s1109_s12, %s1103_s28 }
  0x5c   : > { %v1022_v23 = vld [vmem:[#allocation7] sm:$0xff]   ;;  %p1106_p12 = pneg %p1105_p7 }
  0x5d   : > { %899 = vmatpush3.bf16.msra.mxu1 %v1016_v8  ;;  %v800_v26 = vld [vmem:[%s1438_s2] ss:$0 sm:$0xff]  ;;  %p1112_p10 = por %p1111_p0, %p1110_p13 }
  0x5e   : > { %869 = vmatpush3.bf16.msra.mxu0 %v1001_v2  ;;  %900 = vmatprep.subr.bf16.mxu1 %v1017_v10 }
  0x5f   : > { %870 = vmatprep.subr.bf16.mxu0 %v1002_v3  ;;  %p1113_p3 = pnand %p1112_p10, %p1106_p12 }
  0x61   : > { %901 = vmatpush3.bf16.msra.mxu1 %v1017_v10 }
  0x62   : > { %871 = vmatpush3.bf16.msra.mxu0 %v1002_v3  ;;  %902 = vmatprep.subr.bf16.mxu1 %v1018_v12 }
  0x63   : > { %872 = vmatprep.subr.bf16.mxu0 %v1003_v5 }
  0x65   : > { %903 = vmatpush3.bf16.msra.mxu1 %v1018_v12 }
  0x66   : > { %873 = vmatpush3.bf16.msra.mxu0 %v1003_v5  ;;  %904 = vmatprep.subr.bf16.mxu1 %v1019_v13 }
  0x67   : > { %874 = vmatprep.subr.bf16.mxu0 %v1004_v6 }
  0x69   : > { %905 = vmatpush3.bf16.msra.mxu1 %v1019_v13 }
  0x6a   : > { %875 = vmatpush3.bf16.msra.mxu0 %v1004_v6  ;;  %906 = vmatprep.subr.bf16.mxu1 %v1020_v21 }
  0x6b   : > { %876 = vmatprep.subr.bf16.mxu0 %v1005_v9 }
  0x6d   : > { %907 = vmatpush3.bf16.msra.mxu1 %v1020_v21 }
  0x6e   : > { %877 = vmatpush3.bf16.msra.mxu0 %v1005_v9  ;;  %908 = vmatprep.subr.bf16.mxu1 %v1021_v22 }
  0x6f   : > { %878 = vmatprep.subr.bf16.mxu0 %v1006_v11 }
  0x71   : > { %909 = vmatpush3.bf16.msra.mxu1 %v1021_v22 }
  0x72   : > { %879 = vmatpush3.bf16.msra.mxu0 %v1006_v11  ;;  %910 = vmatprep.subr.bf16.mxu1 %v1022_v23 }
  0x75   : > { %881 = vmatmul.mubr.bf16.vlgmr.msra.gmra.mxu0 %v1008_v14  ;;  %911 = vmatpush3.bf16.msra.mxu1 %v1022_v23 }
  0x76   : > { %884 = vmatprep.mubr.bf16.mxu0 %v1009_v15 }
  0x7d   : > { %885 = vmatmul.mubr.bf16.gmra.mxu0 %v1010_v16 }
  0x7e   : > { %888 = vmatprep.mubr.bf16.mxu0 %v1011_v17 }
  0x85   : > { %889 = vmatmul.mubr.bf16.gmra.mxu0 %v1012_v18 }
  0x86   : > { %892 = vmatprep.mubr.bf16.mxu0 %v1013_v19 }
  0x8d   : > { %893 = vmatmul.mubr.bf16.gmra.mxu0 %v1014_v20 }
 0x135   : > { %v882_v24 = vpop.f32.mrf.mxu0 }
 0x136   : > { %v426_v30 = vadd.f32 %v882_v24, %v800_v26 }
 0x137   : > { %v417_v25 = vpop.f32.mrf.mxu0 }
 0x138   : > { %v418_v28 = vadd.f32 %v800_v26, %v417_v25  ;;  %v482_v37 = vmax.f32 %v426_v30, 0.0 }
 0x139   : > { %v883_v27 = vpop.f32.mrf.mxu0 }
 0x13a   : > { %v429_v29 = vadd.f32 %v883_v27, %v800_v26  ;;  %v480_v35 = vmax.f32 %v418_v28, 0.0 }
 0x13b   : > { %v420_v31 = vpop.f32.mrf.mxu0 }
 0x13c   : > { %v421_v32 = vadd.f32 %v800_v26, %v420_v31  ;;  %v483_v33 = vmax.f32 %v429_v29, 0.0 }
 0x13d   : > { %v886_v34 = vpop.f32.mrf.mxu0 }
 0x13e   : > { %v481_v36 = vmax.f32 %v421_v32, 0.0  ;;  %v497_v40 = vpack.c.bf16 %v483_v33, %v482_v37  ;;  %v442_v44 = vadd.f32 %v886_v34, %v800_v26 }
 0x13f   : > { %v433_v38 = vpop.f32.mrf.mxu0 }
 0x140   : > { %v496_v39 = vpack.c.bf16 %v481_v36, %v480_v35  ;;  %v434_v42 = vadd.f32 %v800_v26, %v433_v38  ;;  %v486_v51 = vmax.f32 %v442_v44, 0.0 }
 0x141   : > { %v887_v41 = vpop.f32.mrf.mxu0 }
 0x142   : > { %v445_v43 = vadd.f32 %v887_v41, %v800_v26  ;;  %912 = vmatprep.mubr.bf16.mxu1 %v496_v39  ;;  %v484_v49 = vmax.f32 %v434_v42, 0.0 }
 0x143   : > { %v436_v45 = vpop.f32.mrf.mxu0  ;;  %913 = vmatmul.mubr.bf16.vlgmr.msra.gmra.mxu1 %v497_v40 }
 0x144   : > { %v437_v46 = vadd.f32 %v800_v26, %v436_v45  ;;  %v487_v47 = vmax.f32 %v445_v43, 0.0 }
 0x145   : > { %v890_v48 = vpop.f32.mrf.mxu0 }
 0x146   : > { %v485_v50 = vmax.f32 %v437_v46, 0.0  ;;  %v499_v54 = vpack.c.bf16 %v487_v47, %v486_v51  ;;  %v458_v58 = vadd.f32 %v890_v48, %v800_v26 }
 0x147   : > { %v449_v52 = vpop.f32.mrf.mxu0 }
 0x148   : > { %v498_v53 = vpack.c.bf16 %v485_v50, %v484_v49  ;;  %v450_v56 = vadd.f32 %v800_v26, %v449_v52  ;;  %v490_v1 = vmax.f32 %v458_v58, 0.0 }
 0x149   : > { %v891_v55 = vpop.f32.mrf.mxu0 }
 0x14a   : > { %v461_v57 = vadd.f32 %v891_v55, %v800_v26  ;;  %916 = vmatprep.mubr.bf16.mxu1 %v498_v53  ;;  %v488_v63 = vmax.f32 %v450_v56, 0.0 }
 0x14b   : > { %v452_v59 = vpop.f32.mrf.mxu0  ;;  %917 = vmatmul.mubr.bf16.gmra.mxu1 %v499_v54 }
 0x14c   : > { %v453_v60 = vadd.f32 %v800_v26, %v452_v59  ;;  %v491_v61 = vmax.f32 %v461_v57, 0.0 }
 0x14d   : > { %v894_v62 = vpop.f32.mrf.mxu0 }
 0x14e   : > { %v489_v0 = vmax.f32 %v453_v60, 0.0  ;;  %v501_v4 = vpack.c.bf16 %v491_v61, %v490_v1  ;;  %v474_v8 = vadd.f32 %v894_v62, %v800_v26 }
 0x14f   : > { %v465_v2 = vpop.f32.mrf.mxu0 }
 0x150   : > { %v500_v3 = vpack.c.bf16 %v489_v0, %v488_v63  ;;  %v466_v6 = vadd.f32 %v800_v26, %v465_v2  ;;  %v494_v14 = vmax.f32 %v474_v8, 0.0 }
 0x151   : > { %v895_v5 = vpop.f32.mrf.mxu0 }
 0x152   : > { %v477_v7 = vadd.f32 %v895_v5, %v800_v26  ;;  %920 = vmatprep.mubr.bf16.mxu1 %v500_v3  ;;  %v492_v12 = vmax.f32 %v466_v6, 0.0 }
 0x153   : > { %v468_v9 = vpop.f32.mrf.mxu0  ;;  %921 = vmatmul.mubr.bf16.gmra.mxu1 %v501_v4 }
 0x154   : > { %v469_v10 = vadd.f32 %v800_v26, %v468_v9  ;;  %v495_v11 = vmax.f32 %v477_v7, 0.0 }
 0x156   : > { %v493_v13 = vmax.f32 %v469_v10, 0.0  ;;  %v503_v16 = vpack.c.bf16 %v495_v11, %v494_v14 }
 0x158   : > { %v502_v15 = vpack.c.bf16 %v493_v13, %v492_v12 }
 0x15a   : > { %924 = vmatprep.mubr.bf16.mxu1 %v502_v15 }
 0x15b   : > { %925 = vmatmul.mubr.bf16.gmra.mxu1 %v503_v16 }
 0x203   : > { %v914_v17 = vpop.f32.mrf.mxu1 }
 0x204   : > { %667 = vst [vmem:[%s1368_s5 + $0x10] sm:$0xff] %v914_v17 }
 0x205   : > { %v602_v18 = vpop.f32.mrf.mxu1 }
 0x206   : > { %665 = vst [vmem:[%s1368_s5] sm:$0xff] %v602_v18 }
 0x207   : > { %v915_v19 = vpop.f32.mrf.mxu1 }
 0x208   : > { %668 = vst [vmem:[%s1368_s5 + $0x18] sm:$0xff] %v915_v19 }
 0x209   : > { %v605_v20 = vpop.f32.mrf.mxu1 }
 0x20a   : > { %666 = vst [vmem:[%s1368_s5 + $0x8] sm:$0xff] %v605_v20 }
 0x20b   : > { %v918_v21 = vpop.f32.mrf.mxu1 }
 0x20c   : > { %671 = vst [vmem:[%s1368_s5 + $0x30] sm:$0xff] %v918_v21 }
 0x20d   : > { %v618_v22 = vpop.f32.mrf.mxu1 }
 0x20e   : > { %669 = vst [vmem:[%s1368_s5 + $0x20] sm:$0xff] %v618_v22 }
 0x20f   : > { %v919_v23 = vpop.f32.mrf.mxu1 }
 0x210   : > { %672 = vst [vmem:[%s1368_s5 + $0x38] sm:$0xff] %v919_v23 }
 0x211   : > { %v621_v24 = vpop.f32.mrf.mxu1 }
 0x212   : > { %670 = vst [vmem:[%s1368_s5 + $0x28] sm:$0xff] %v621_v24 }
 0x213   : > { %v922_v25 = vpop.f32.mrf.mxu1 }
 0x214   : > { %675 = vst [vmem:[%s1368_s5 + $0x50] sm:$0xff] %v922_v25 }
 0x215   : > { %v634_v26 = vpop.f32.mrf.mxu1 }
 0x216   : > { %673 = vst [vmem:[%s1368_s5 + $0x40] sm:$0xff] %v634_v26 }
 0x217   : > { %v923_v27 = vpop.f32.mrf.mxu1 }
 0x218   : > { %676 = vst [vmem:[%s1368_s5 + $0x58] sm:$0xff] %v923_v27 }
 0x219   : > { %v637_v28 = vpop.f32.mrf.mxu1 }
 0x21a   : > { %674 = vst [vmem:[%s1368_s5 + $0x48] sm:$0xff] %v637_v28 }
 0x21b   : > { %v926_v29 = vpop.f32.mrf.mxu1 }
 0x21c   : > { %679 = vst [vmem:[%s1368_s5 + $0x70] sm:$0xff] %v926_v29 }
 0x21d   : > { %v650_v30 = vpop.f32.mrf.mxu1 }
 0x21e   : > { %677 = vst [vmem:[%s1368_s5 + $0x60] sm:$0xff] %v650_v30 }
 0x21f   : > { %v927_v31 = vpop.f32.mrf.mxu1 }
 0x220   : > { %680 = vst [vmem:[%s1368_s5 + $0x78] sm:$0xff] %v927_v31 }
 0x221   : > { %v653_v32 = vpop.f32.mrf.mxu1 }
 0x222   : > { %678 = vst [vmem:[%s1368_s5 + $0x68] sm:$0xff] %v653_v32 }
 0x223   : > { %1116 = shalt.err (!%p1113_p3)
}
 0x224   : > { %s1117_s13 = scalar_lea.hbm %s1389_s27, 2048  ;;  %s1121_s21 = scalar_lea.hbm %s1440_s4, 4096 }
 0x225   : > { %p1118_p11 = scmp.ne.s32.totalorder %s1389_s27, %s1117_s13  ;;  %p1122_p4 = scmp.lt.s32.totalorder %s1389_s27, %s1440_s4 }
 0x226   : > { %p1123_p6 = scmp.lt.s32.totalorder %s1121_s21, %s1117_s13 }
 0x227   : > { %p1119_p9 = pnand %p1118_p11, %p1455_p2 }
 0x228   : > { %p1124_p8 = por %p1123_p6, %p1122_p4 }
 0x229   : > { %p1120_p1 = pneg %p1119_p9 }
 0x22b   : > { %p1125_p5 = pnand %p1124_p8, %p1120_p1 }
 0x22d   : > { %1128 = shalt.err (!%p1125_p5)
}
 0x22e   : > { %s1179_s5 = smov 128   ;;  %s1180_s29 = smov 8  }
 0x22f   : > { %938 = dma.vmem_to_hbm [thread:$0]  (%p1455_p2), %s1391_s7, 2048, %s1389_s27, %s682_s24, %s1179_s5, %s1179_s5, %s1180_s29  }
 0x230 PF: > { %s710_s8 = sand.u32 1, %s1159_s15   ;;  %p1456_p7 = scmp.ne.s32.totalorder %s1446_s22, 0 }
 0x231   : > { %p1457_p12 = scmp.ge.s32.totalorder %s1171_s18, 2  ;;  %s711_s9 = scalar_lea.sflag [#allocation4], %s710_s8 }
 0x233   : > { %p952_p13 = pnand %p1457_p12, %p1456_p7 }
 0x235   : > { %p953_p0 = pneg %p952_p13 }
 0x237   : > { %1154 = dma.done.wait (%p953_p0), %s711_s9, 2048  }
 0x238   : > { %1156 = vsyncadd (%p953_p0), %s711_s9, 4294965248  ;;  %p18_p10 = scmp.ge.s32.totalorder %s1284_s11, 4   ;;  %s1458_s15 = smov %s1163_s16 }
 0x239   : > { %s1459_s16 = smov %s1167_s17  ;;  %s1460_s17 = smov %s1300_s20 }
 0x23a   : > { %s1461_s18 = smov %s1284_s11  ;;  %20 = sbr.rel (!%p18_p10) target bundleno = 6 (0x6), region = 89 }
 0x23f   :  { %716 = vsyncpa [#allocation3], 1 }
 0x240   :  { %718 = vsyncpa [#allocation3 + $0x1], 1 }
 0x241   :  { %719 = vsyncpa [#allocation6], 1 }
 0x242   :  { %720 = vsyncpa [#allocation4], 1 }
 0x243   :  { %722 = vsyncpa [#allocation4 + $0x1], 1 }

</bundles_post_ra>
